<compile_context>
chip_gen: v7x
topology: tpu7x:2x2x1
jax: 0.10.0
libtpu: 0.0.40
codegen_flags: <defaults>
</compile_context>

<pallas_src>
import numpy as np
import jax
import jax.numpy as jnp
from jax.experimental import pallas as pl
from jax.experimental.pallas import tpu as pltpu

_VMEM_LIMIT = 32 * 1024 * 1024            # raise v5e's 16 MiB scoped default; safe on v6e/v7x
_SMALL_TILE_TARGET_BYTES = 2 * 1024 * 1024  # ~2 MiB (padded) per channel-batched tile
_SMALL_PATH_VMEM_BUDGET = 24 * 1024 * 1024  # headroom under _VMEM_LIMIT for 2x(in+out) buffers


def _align(n, m):
    return ((n + m - 1) // m) * m


def _t2d_tile_kernel(x_ref, o_ref):
    # x_ref: (tH, tW)  ->  o_ref: (tW, tH)   (leading nc dim squeezed away)
    # XLU transpose.  TODO(synk): on v7x, if a bundle dump shows the
    # vector-extended (XLU) slot binding before the ~3.2 TB/s HBM roofline,
    # switch this to an MXU identity-matmul transpose.
    o_ref[...] = x_ref[...].T


def _t3d_batch_kernel(x_ref, o_ref):
    # x_ref: (cb, H, W)  ->  o_ref: (cb, W, H)
    # TODO(synk): when H < 128 the stores here are masked (vst.msk) with short
    # writeback rows.  The lane-dense (cb, W*H) output suggested in review
    # needs an in-kernel (cb, W, H) -> (cb, W*H) reshape across sub-128 minor
    # dims, whose Mosaic lowering is not guaranteed; we keep the
    # always-lowerable transpose (pltpu.einshape('chw->cwh') is the drop-in
    # alternative once verified on the target toolchain).
    o_ref[...] = jnp.transpose(x_ref[...], (0, 2, 1))


def _pick_tile(dim, itemsize):
    """Largest legal tile along one spatial dim.

    A full-extent block is always legal, so any dim <= cap uses the whole dim.
    Otherwise return the largest multiple-of-128 divisor of `dim` up to the
    cap.  Cap = 1024 f32 elements (4 MiB tiles); do NOT raise to 2048: the
    double/triple-buffered in+out pair would need ~64 MiB and cannot fit
    v7x's 64 MiB physical VMEM (and exceeds the 32 MiB scoped limit anyway).
    """
    cap = 1024 if itemsize <= 4 else 512
    if dim <= cap:
        return dim
    t = cap
    while t >= 128:
        if dim % t == 0:
            return t
        t -= 128
    return None


def _transpose_hw(x):
    """Swap the last two (spatial) axes of an NCHW tensor with a Pallas kernel."""
    N, C, H, W = x.shape
    NC = N * C
    xr = x.reshape(NC, H, W)              # collapse batch/channel: free reshape, denser grid
    itemsize = jnp.dtype(x.dtype).itemsize
    cost = pl.CostEstimate(
        flops=0, transcendentals=0, bytes_accessed=2 * NC * H * W * itemsize
    )

    tH = _pick_tile(H, itemsize)
    tW = _pick_tile(W, itemsize)

    # Lane/sublane-padded per-channel VMEM footprint of full-plane in/out tiles.
    padded_in = _align(H, 8) * _align(W, 128) * itemsize
    padded_out = _align(W, 8) * _align(H, 128) * itemsize
    per_chan = max(padded_in, padded_out)

    if tH is not None and tW is not None and per_chan > _SMALL_TILE_TARGET_BYTES:
        # ---- Large-plane path: spatially tiled, lane-aligned transpose. ----
        grid = (NC, H // tH, W // tW)
        out = pl.pallas_call(
            _t2d_tile_kernel,
            out_shape=jax.ShapeDtypeStruct((NC, W, H), x.dtype),
            grid=grid,
            in_specs=[
                pl.BlockSpec(
                    (pl.Squeezed(), tH, tW),
                    lambda nc, i, j: (nc, i, j),
                    # Steps are DMA-bound (tiny XLU compute): a third input
                    # buffer hides more DMA latency; at 1024-wide f32 tiles
                    # 3x2MiB(in) + 2x2MiB(out) per 1024x512 step stays well
                    # inside the 32 MiB scoped VMEM on all generations.
                    pipeline_mode=pl.Buffered(3),
                )
            ],
            out_specs=pl.BlockSpec(
                (pl.Squeezed(), tW, tH), lambda nc, i, j: (nc, j, i)
            ),
            compiler_params=pltpu.CompilerParams(
                dimension_semantics=("parallel", "parallel", "parallel"),
                vmem_limit_bytes=_VMEM_LIMIT,
            ),
            cost_estimate=cost,
        )(xr)
    elif 4 * per_chan <= _SMALL_PATH_VMEM_BUDGET:
        # ---- Small/irregular-plane path: full (H, W) planes (full-extent
        # blocks are always legal), batched over channels to amortize the
        # ~0.35 us per-grid-step overhead. ----
        cb = max(1, min(NC, _SMALL_TILE_TARGET_BYTES // per_chan))
        if NC >= 2:
            # v7x has 2 TensorCores: keep >= 2 parallel grid blocks so both
            # get work (no effect on 1-TC v5e/v6e).
            cb = min(cb, max(1, NC // 2))
        # pl.cdiv grid with a partial leading block instead of a divisor
        # search (prime/awkward NC no longer collapses cb toward 1).  The
        # leading dim is not subject to the (8,128) rule; OOB reads are
        # padding and OOB writes are clipped, harmless for a pure
        # per-element permutation.
        grid = (pl.cdiv(NC, cb),)
        out = pl.pallas_call(
            _t3d_batch_kernel,
            out_shape=jax.ShapeDtypeStruct((NC, W, H), x.dtype),
            grid=grid,
            in_specs=[pl.BlockSpec((cb, H, W), lambda g: (g, 0, 0))],
            out_specs=pl.BlockSpec((cb, W, H), lambda g: (g, 0, 0)),
            compiler_params=pltpu.CompilerParams(
                dimension_semantics=("parallel",),
                vmem_limit_bytes=_VMEM_LIMIT,
            ),
            cost_estimate=cost,
        )(xr)
    else:
        # TODO(synk): plane is huge AND has no multiple-of-128 tiling along
        # H or W; a masked partial-tile kernel would be needed.  Fall back to
        # XLA's transpose rather than overflowing VMEM / failing to compile.
        out = jnp.swapaxes(xr, 1, 2)

    return out.reshape(N, C, W, H)


class ChangeCoord:
    """JAX/Pallas port of the PyTorch ChangeCoord module (2d case)."""

    def __init__(self, perm_dims, dimension="2d"):
        if dimension != "2d":
            # TODO(synk): '3d' case (5-D NCDHW permutation) is not wired to a
            # Pallas kernel here; only the 2d forward is implemented.
            raise ValueError("only dimension='2d' implemented in this script")
        self.dimension = dimension
        perm_dims = np.array(perm_dims)
        inv_perm_dims = np.argsort(perm_dims)
        self.permutation = (0, 1, int(perm_dims[0]) + 2, int(perm_dims[1]) + 2)
        self.inv_permutation = (
            0,
            1,
            int(inv_perm_dims[0]) + 2,
            int(inv_perm_dims[1]) + 2,
        )

    def _run(self, x, permutation):
        if permutation[2:] == (2, 3):
            # Identity spatial permutation: no data movement required at all.
            return x
        assert permutation[2:] == (3, 2)
        return _transpose_hw(x)

    def forward(self, x):
        return self._run(x, self.permutation)

    def transpose(self, x):
        return self._run(x, self.inv_permutation)

    __call__ = forward


if __name__ == "__main__":
    key = jax.random.PRNGKey(0)

    # ChangeCoord with perm_dims=(1, 0) -> swaps H and W (permutation (0,1,3,2))
    mod = ChangeCoord(perm_dims=(1, 0), dimension="2d")

    # --- small-plane (channel-batched) path: batch=2, channels=4, spatial=16x16
    x = jax.random.normal(key, (2, 4, 16, 16), dtype=jnp.float32)
    y = mod(x)
    jax.block_until_ready(y)
    y_ref = jnp.transpose(x, mod.permutation)
    assert y.shape == y_ref.shape, (y.shape, y_ref.shape)
    np.testing.assert_allclose(np.asarray(y), np.asarray(y_ref), rtol=0, atol=0)

    # round-trip through the inverse permutation
    x_back = mod.transpose(y)
    jax.block_until_ready(x_back)
    np.testing.assert_allclose(np.asarray(x_back), np.asarray(x), rtol=0, atol=0)

    # --- small path with a partial leading block (NC=7 not divisible by cb=3)
    x1 = jax.random.normal(jax.random.PRNGKey(1), (7, 1, 16, 16), dtype=jnp.float32)
    y1 = mod(x1)
    jax.block_until_ready(y1)
    np.testing.assert_allclose(
        np.asarray(y1), np.asarray(jnp.transpose(x1, mod.permutation)), rtol=0, atol=0
    )

    # --- small path with lane-dense (>=128-wide) output rows: 256x128 plane
    x2 = jax.random.normal(jax.random.PRNGKey(2), (1, 2, 256, 128), dtype=jnp.float32)
    y2 = mod(x2)
    jax.block_until_ready(y2)
    np.testing.assert_allclose(
        np.asarray(y2), np.asarray(jnp.transpose(x2, mod.permutation)), rtol=0, atol=0
    )

    # --- large-plane tiled path (multi-tile grid, Buffered(3) input): 2048x512
    x3 = jax.random.normal(jax.random.PRNGKey(3), (1, 1, 2048, 512), dtype=jnp.float32)
    y3 = mod(x3)
    jax.block_until_ready(y3)
    np.testing.assert_allclose(
        np.asarray(y3), np.asarray(jnp.transpose(x3, mod.permutation)), rtol=0, atol=0
    )

    # --- identity permutation path: no kernel, returns input unchanged
    mod_id = ChangeCoord(perm_dims=(0, 1), dimension="2d")
    np.testing.assert_allclose(np.asarray(mod_id(x)), np.asarray(x), rtol=0, atol=0)

    print("KERNEL_OK")
</pallas_src>

<mosaic_0001>
module attributes {stable_mosaic.version = 11 : i64} {
  func.func @_t3d_batch_kernel(%arg0: i32, %arg1: memref<4x16x16xf32, #tpu.memory_space<vmem>>, %arg2: memref<4x16x16xf32, #tpu.memory_space<vmem>>) attributes {dimension_semantics = [#tpu.dimension_semantics<parallel>], iteration_bounds = array<i64: 2>, scalar_prefetch = 0 : i64, scratch_operands = 0 : i64, tpu.core_type = #tpu.core_type<tc>, window_params = [{transform_indices = @transform_0, window_bounds = array<i64: 4, 16, 16>}, {transform_indices = @transform_1, window_bounds = array<i64: 4, 16, 16>}]} {
    %c0 = arith.constant 0 : index
    %c0_0 = arith.constant 0 : index
    %c0_1 = arith.constant 0 : index
    %0 = vector.load %arg1[%c0, %c0_0, %c0_1] : memref<4x16x16xf32, #tpu.memory_space<vmem>>, vector<4x16x16xf32>
    %1 = tpu.transpose %0, [0, 2, 1] : vector<4x16x16xf32> -> vector<4x16x16xf32>
    %c0_2 = arith.constant 0 : index
    %c0_3 = arith.constant 0 : index
    %c0_4 = arith.constant 0 : index
    %2 = vector.load %arg2[%c0_2, %c0_3, %c0_4] : memref<4x16x16xf32, #tpu.memory_space<vmem>>, vector<4x16x16xf32>
    tpu.vector_store %arg2[%c0_2, %c0_3, %c0_4], %1 {strides = array<i32>} : memref<4x16x16xf32, #tpu.memory_space<vmem>>, vector<4x16x16xf32>,
    return
  }
  func.func @transform_0(%arg0: i32) -> (i32, i32, i32) {
    %c0_i32 = arith.constant 0 : i32
    %c0_i32_0 = arith.constant 0 : i32
    %c0_i32_1 = arith.constant 0 : i32
    return %arg0, %c0_i32, %c0_i32_0 : i32, i32, i32
  }
  func.func @transform_1(%arg0: i32) -> (i32, i32, i32) {
    %c0_i32 = arith.constant 0 : i32
    %c0_i32_0 = arith.constant 0 : i32
    %c0_i32_1 = arith.constant 0 : i32
    return %arg0, %c0_i32, %c0_i32_0 : i32, i32, i32
  }
}

</mosaic_0001>

<bundles_post_ra>
// kernel: tpu_custom_call.1
= control target key start
LH: loop header
LB: loop body
LE: loop exit
PB: predicated region body
PF: predicated region fallthrough
CT: control target
= control target key end

     0   :  { %6 = vsyncpa [#allocation3], 0  ;;  %s726_s0 = inlined_call_operand.hbm [shape: f32[8,16,16], index: 0, kind: input, shape index: {}]   ;;  %s727_s1 = inlined_call_operand.hbm [shape: f32[8,16,16], index: 1, kind: output, shape index: {}]  }
   0x1   :  { %8 = vsyncpa [#allocation3 + $0x1], 0 }
   0x2   :  { %9 = vsyncpa [#allocation4], 0 }
   0x3   :  { %11 = vsyncpa [#allocation4 + $0x1], 0  ;;  %s556_s6 = smov 0   ;;  %s558_s7 = smov 0  }
   0x4   :  { %s560_s8 = smov 0   ;;  %s562_s9 = smov 0  }
   0x5 LB: > { %s577_s10 = sadd.s32 4294967295, %s538_s9   ;;  %s371_s11 = sadd.s32 4294967294, %s538_s9   ;;  %s538_s9 = sphi %s562_s9, %s740_s9   ;;  %s534_s8 = sphi %s560_s8, %s739_s8   ;;  %s530_s7 = sphi %s558_s7, %s738_s7   ;;  %s526_s6 = sphi %s556_s6, %s737_s6  }
   0x6   : > { %s581_s12 = sadd.s32 1, %s538_s9   ;;  %s24_s13 = sadd.s32 1, %s534_s8 }
   0x7   : > { %s21_s14 = ssub.s32 %s538_s9, %s581_s12  ;;  %p31_p0 = scmp.ne.s32.totalorder %s534_s8, %s530_s7 }
   0x8   : > { %p22_p1 = scmp.eq.s32.totalorder %s21_s14, 0  ;;  %p32_p2 = scmp.eq.s32.totalorder %s538_s9, 0 }
   0x9   : > { %p37_p3 = scmp.ne.s32.totalorder %s530_s7, %s526_s6  ;;  %p38_p4 = scmp.eq.s32.totalorder %s577_s10, 0 }
   0xa   : > { %s593_s15 = scalar_select %p22_p1, %s534_s8, %s24_s13  }
   0xb   : > { %p595_p5 = por %p32_p2, %p31_p0  ;;  %p599_p6 = por %p38_p4, %p37_p3 }
   0xc   : > { %p61_p7 = scmp.eq.s32.totalorder %s577_s10, 1  ;;  %p67_p8 = scmp.eq.s32.totalorder %s371_s11, 1 }
   0xd   : > { %p403_p10 = scmp.lt.s32.totalorder %s538_s9, 2  ;;  %s87_s20 = sand.u32 1, %s534_s8  }
   0xe   : > { %p606_p11 = por %p61_p7, %p31_p0  ;;  %p610_p12 = por %p67_p8, %p37_p3 }
   0xf   : > { %s388_s21 = sshll.u32 %s538_s9, 10  ;;  %s374_s22 = sshll.u32 %s87_s20, 6 }
  0x10   : > { %s731_s18 = scalar_select %p606_p11, 1, 0 }
  0x11   : > { %s732_s19 = scalar_select %p610_p12, 1, 0 }
  0x12   : > { %s619_s25 = scalar_lea.hbm %s726_s0, %s388_s21  ;;  %s91_s26 = scalar_lea.vmem [#allocation2], %s374_s22 }
  0x13   : > { %s99_s27 = sshll.u32 %s91_s26, 4  ;;  %p623_p13 = pnand %p403_p10, %p595_p5  ;;  %s627_s27 = int_to_ptr.vmem [resolvable:$true] %s99_s27 }
  0x14   : > { %s629_s29 = scalar_lea.sflag [#allocation3], %s87_s20  ;;  %s442_s30 = scalar_lea.hbm %s619_s25, 1024 }
  0x15   : > { %p443_p0 = scmp.ne.s32.totalorder %s619_s25, %s442_s30  ;;  %p444_p1 = pneg %p623_p13 }
  0x16   : > { %s447_s4 = scalar_lea.hbm %s726_s0, 2048  ;;  %p448_p4 = scmp.lt.u32.totalorder %s619_s25, %s726_s0 }
  0x17   : > { %p445_p2 = pnand %p444_p1, %p443_p0  ;;  %p449_p5 = scmp.lt.u32.totalorder %s447_s4, %s442_s30 }
  0x18   : > { %p451_p8 = scmp.lt.u32.totalorder %s442_s30, %s619_s25 }
  0x19   : > { %p446_p3 = pneg %p445_p2  ;;  %p450_p7 = por %p449_p5, %p448_p4 }
  0x1b   : > { %p452_p10 = por %p451_p8, %p450_p7 }
  0x1d   : > { %p453_p9 = pnand %p452_p10, %p446_p3 }
  0x1f   : > { %456 = shalt.err (!%p453_p9)
}
  0x20   : > { %s457_s13 = scalar_lea.vmem %s627_s27, 1024  ;;  %s540_s14 = smov [#allocation2]  }
  0x21   : > { %p458_p0 = scmp.ne.s32.totalorder %s627_s27, %s457_s13  ;;  %s462_s16 = sshll.u32 %s540_s14, 4  ;;  %s463_s16 = int_to_ptr.vmem [resolvable:$false] %s462_s16 }
  0x22   : > { %s464_s20 = scalar_lea.vmem %s463_s16, 2048  ;;  %p465_p11 = scmp.lt.s32.totalorder %s627_s27, %s463_s16 }
  0x23   : > { %p460_p2 = pnand %p458_p0, %p444_p1  ;;  %p466_p4 = scmp.lt.s32.totalorder %s464_s20, %s457_s13 }
  0x25   : > { %p461_p12 = pneg %p460_p2  ;;  %p467_p5 = por %p466_p4, %p465_p11 }
  0x27   : > { %p468_p7 = pnand %p467_p5, %p461_p12 }
  0x29   : > { %471 = shalt.err (!%p468_p7)
}
  0x2a   : > { %s541_s21 = smov 128   ;;  %s542_s22 = smov 8  }
  0x2b   : > { %398 = dma.hbm_to_vmem [thread:$0]  (!%p623_p13), %s619_s25, 1024, %s627_s27, %s629_s29, %s541_s21, %s541_s21, %s542_s22  }
  0x2c   : > { %p378_p9 = scmp.ge.s32.totalorder %s538_s9, 1  ;;  %p107_p1 = scmp.lt.s32.totalorder %s538_s9, 3 }
  0x2e   : > { %p108_p3 = pnand %p378_p9, %p107_p1 }
  0x2f   : > { %s660_s23 = sand.u32 (!%p108_p3), 1, %s530_s7  }
  0x30   : > { %111 = sbr.rel (%p108_p3) target bundleno = 213 (0xd5), region = 24  ;;  %s379_s24 = sshll.u32 (!%p108_p3), %s660_s23, 6 }
  0x31   : > { %s114_s26 = scalar_lea.sflag (!%p108_p3), [#allocation3], %s660_s23  ;;  %s117_s30 = scalar_lea.vmem (!%p108_p3), [#allocation2], %s379_s24 }
  0x37   : > { %517 = dma.done.wait (%p599_p6), %s114_s26, 1024  }
  0x38   : > { %519 = vsyncadd (%p599_p6), %s114_s26, 4294966272  ;;  %v140_v0 = vld [vmem:[%s117_s30 + $0x10] sm:$0xff]  ;;  %v138_v1 = vld [vmem:[%s117_s30] sm:$0xff]  ;;  %vm274_vm0 = vcmask 130048   ;;  %s135_s17 = scalar_lea.vmem [#allocation5], %s379_s24  ;;  %s390_s27 = sshll.u32 %s577_s10, 10 }
  0x39   : > { %178 = vxpose.xlu1.b32.start [1/2] (short) (narrow) %v140_v0, 16  ;;  %146 = vxpose.xlu0.b32.start [1/2] (short) (narrow) %v138_v1, 16  ;;  %v141_v2 = vld [vmem:[%s117_s30 + $0x18] sm:$0xff]  ;;  %v139_v3 = vld [vmem:[%s117_s30 + $0x8] sm:$0xff]  ;;  %v144_v4 = vld [vmem:[%s117_s30 + $0x30] sm:$0xff]  ;;  %s298_s25 = sshll.u32 %s135_s17, 4  ;;  %s680_s2 = scalar_lea.hbm %s727_s1, %s390_s27  ;;  %s673_s25 = int_to_ptr.vmem [resolvable:$true] %s298_s25 }
  0x3a   : > { %v142_v5 = vld [vmem:[%s117_s30 + $0x20] sm:$0xff]  ;;  %v145_v6 = vld [vmem:[%s117_s30 + $0x38] sm:$0xff]  ;;  %v143_v7 = vld [vmem:[%s117_s30 + $0x28] sm:$0xff]  ;;  %s284_s10 = scalar_lea.sflag [#allocation4], %s660_s23  ;;  %s472_s3 = scalar_lea.vmem %s673_s25, 1024 }
  0x3b   : > { %p473_p6 = scmp.ne.s32.totalorder %s673_s25, %s472_s3  ;;  %p734_p11 = scmp.ne.s32.totalorder %s731_s18, 0 }
  0x3c   : > { %s543_s4 = smov [#allocation5]  }
  0x3d   : > { %179 = vxpose.xlu1.b32.end [2/2] (short) (narrow) %v141_v2, 16  ;;  %147 = vxpose.xlu0.b32.end [2/2] (short) (narrow) %v139_v3, 16  ;;  %p474_p12 = pnand %p473_p6, %p734_p11  ;;  %s476_s5 = sshll.u32 %s543_s4, 4  ;;  %s477_s5 = int_to_ptr.vmem [resolvable:$false] %s476_s5 }
  0x3e   : > { %s478_s11 = scalar_lea.vmem %s477_s5, 2048  ;;  %p479_p8 = scmp.lt.s32.totalorder %s673_s25, %s477_s5 }
  0x3f   : > { %p475_p13 = pneg %p474_p12  ;;  %p480_p10 = scmp.lt.s32.totalorder %s478_s11, %s472_s3 }
  0x41   : > { %242 = vxpose.xlu1.b32.start [1/2] (short) (narrow) %v144_v4, 16  ;;  %210 = vxpose.xlu0.b32.start [1/2] (short) (narrow) %v142_v5, 16  ;;  %p481_p0 = por %p480_p10, %p479_p8 }
  0x43   : > { %p482_p2 = pnand %p481_p0, %p475_p13 }
  0x45   : > { %243 = vxpose.xlu1.b32.end [2/2] (short) (narrow) %v145_v6, 16  ;;  %211 = vxpose.xlu0.b32.end [2/2] (short) (narrow) %v143_v7, 16 }
  0xb9   : > { %v194_v8 = vpop.trf.xlu1  ;;  %v162_v9 = vpop.trf.xlu0 }
  0xba   : > { %277 = vst.msk [vmem:[%s135_s17 + $0x10] sm:$0xff] %vm274_vm0, %v194_v8  ;;  %275 = vst.msk [vmem:[%s135_s17] sm:$0xff] %vm274_vm0, %v162_v9 }
  0xbd   : > { %v195_v10 = vpop.trf.xlu1  ;;  %v163_v11 = vpop.trf.xlu0 }
  0xbe   : > { %278 = vst.msk [vmem:[%s135_s17 + $0x18] sm:$0xff] %vm274_vm0, %v195_v10  ;;  %276 = vst.msk [vmem:[%s135_s17 + $0x8] sm:$0xff] %vm274_vm0, %v163_v11 }
  0xc1   : > { %v258_v12 = vpop.trf.xlu1  ;;  %v226_v13 = vpop.trf.xlu0 }
  0xc2   : > { %281 = vst.msk [vmem:[%s135_s17 + $0x30] sm:$0xff] %vm274_vm0, %v258_v12  ;;  %279 = vst.msk [vmem:[%s135_s17 + $0x20] sm:$0xff] %vm274_vm0, %v226_v13 }
  0xc5   : > { %v259_v14 = vpop.trf.xlu1  ;;  %v227_v15 = vpop.trf.xlu0 }
  0xc6   : > { %282 = vst.msk [vmem:[%s135_s17 + $0x38] sm:$0xff] %vm274_vm0, %v259_v14  ;;  %280 = vst.msk [vmem:[%s135_s17 + $0x28] sm:$0xff] %vm274_vm0, %v227_v15 }
  0xc7   : > { %485 = shalt.err (!%p482_p2)
}
  0xc8   : > { %s486_s13 = scalar_lea.hbm %s680_s2, 1024  ;;  %s490_s20 = scalar_lea.hbm %s727_s1, 2048 }
  0xc9   : > { %p487_p4 = scmp.ne.s32.totalorder %s680_s2, %s486_s13  ;;  %p491_p9 = scmp.lt.u32.totalorder %s680_s2, %s727_s1 }
  0xca   : > { %p492_p1 = scmp.lt.u32.totalorder %s490_s20, %s486_s13  ;;  %p494_p6 = scmp.lt.u32.totalorder %s486_s13, %s680_s2 }
  0xcb   : > { %p488_p5 = pnand %p487_p4, %p734_p11 }
  0xcc   : > { %p493_p3 = por %p492_p1, %p491_p9 }
  0xcd   : > { %p489_p7 = pneg %p488_p5 }
  0xce   : > { %p495_p12 = por %p494_p6, %p493_p3 }
  0xd0   : > { %p496_p13 = pnand %p495_p12, %p489_p7 }
  0xd2   : > { %499 = shalt.err (!%p496_p13)
}
  0xd3   : > { %s544_s24 = smov 128   ;;  %s545_s26 = smov 8  }
  0xd4   : > { %393 = dma.vmem_to_hbm [thread:$0]  (%p734_p11), %s673_s25, 1024, %s680_s2, %s284_s10, %s544_s24, %s544_s24, %s545_s26  }
  0xd5 PF: > { %s313_s30 = sand.u32 1, %s526_s6   ;;  %p735_p8 = scmp.ne.s32.totalorder %s732_s19, 0 }
  0xd6   : > { %p736_p10 = scmp.ge.s32.totalorder %s538_s9, 2  ;;  %s314_s17 = scalar_lea.sflag [#allocation4], %s313_s30 }
  0xd8   : > { %p400_p0 = pnand %p736_p10, %p735_p8 }
  0xda   : > { %521 = dma.done.wait (!%p400_p0), %s314_s17, 1024  }
  0xdb   : > { %523 = vsyncadd (!%p400_p0), %s314_s17, 4294966272  ;;  %p14_p2 = scmp.ge.s32.totalorder %s581_s12, 4   ;;  %s737_s6 = smov %s530_s7 }
  0xdc   : > { %s738_s7 = smov %s534_s8  ;;  %s739_s8 = smov %s593_s15 }
  0xdd   : > { %s740_s9 = smov %s581_s12  ;;  %16 = sbr.rel (!%p14_p2) target bundleno = 5 (0x5), region = 69 }
  0xe4   :  { %319 = vsyncpa [#allocation3], 1 }
  0xe5   :  { %321 = vsyncpa [#allocation3 + $0x1], 1 }
  0xe6   :  { %322 = vsyncpa [#allocation4], 1 }
  0xe7   :  { %324 = vsyncpa [#allocation4 + $0x1], 1 }

</bundles_post_ra>
